<compile_context>
chip_gen: v6e
topology: v6e:2x2x1
jax: 0.10.0
libtpu: 0.0.40
codegen_flags: <defaults>
</compile_context>

<pallas_src>
import math
import functools

import jax
import jax.numpy as jnp
from jax import lax
from jax.experimental import pallas as pl
from jax.experimental.pallas import tpu as pltpu


def _round_up(n, m):
    return ((n + m - 1) // m) * m


def _adapter_kernel(x_ref, y_ref, w_ref, ps_ref, hs_ref, hb_ref, o_ref):
    eps = 1e-8
    x = x_ref[...]                       # (TB, x_dim)   f32 or bf16
    w = w_ref[...]                       # (hid, x_dim)  same dtype as x

    # v^T = W @ x^T  -> (hid, TB).  Both operands contract on their last (lane)
    # axis (q@k^T pattern) so the large x tile needs no relayout.
    v_t = lax.dot_general(w, x, (((1,), (1,)), ((), ())),
                          preferred_element_type=jnp.float32)

    # cosine(v, P) with |P| and 1/temperature pre-folded into ps_ref:
    #   g^T = (P_n/T @ v^T) * 1/(|v| + eps)
    inv_vn = pl.reciprocal(
        jnp.sqrt(jnp.sum(v_t * v_t, axis=0, keepdims=True)) + eps)   # (1, TB)
    logits_t = jnp.dot(ps_ref[...], v_t,
                       preferred_element_type=jnp.float32)           # (H, TB)

    # softmax over heads (sublane axis).
    g = logits_t * inv_vn
    g = g - jnp.max(g, axis=0, keepdims=True)
    e = jnp.exp(g)
    gate = e * pl.reciprocal(jnp.sum(e, axis=0, keepdims=True))      # (H, TB)

    # heads(y): pre-resolved affine form (covers forward and inverse modes).
    heads_t = hs_ref[...] * y_ref[...] + hb_ref[...]                 # (H, TB)

    # (gate * heads).sum over heads -> lane-dense (1, TB) store.
    o_ref[...] = jnp.sum(gate * heads_t, axis=0, keepdims=True)


def _choose_tile_rows(B, x_dim, itemsize, hid):
    # Target a ~24 MiB working set (double-buffered x tile + resident W), which
    # is safe under the v7x 32 MiB scoped VMEM budget and leaves headroom on
    # v5e/v6e.  TB must be a multiple of 128 so y/out (1, TB) blocks stay
    # lane-aligned when the grid has more than one step.
    budget = 24 * 1024 * 1024
    avail = max(budget - 2 * hid * x_dim * itemsize, 0)
    cap = (avail // (2 * x_dim * itemsize)) // 128 * 128
    cap = int(min(2048, max(128, cap)))
    return min(cap, _round_up(B, 128))


def model_adapter_forward(x, y, params, *, temperature=4, inverse=False,
                          x_dtype=jnp.float32):
    """x: (B, ...) flattened to (B, x_dim); y: (B,). Returns (B,) float32."""
    eps = 1e-8
    B = x.shape[0]
    x2 = x.reshape(B, -1)
    x_dim = x2.shape[1]

    w = params["w"]                                    # (hid, x_dim)
    p = params["p"]                                    # (H, hid)
    hid = w.shape[0]
    H = p.shape[0]

    # One-time constant prep (hoisted out of the kernel).
    p_f32 = p.astype(jnp.float32)
    p_n = p_f32 / (jnp.sqrt(jnp.sum(p_f32 * p_f32, axis=-1, keepdims=True)) + eps)
    p_scaled = p_n * (1.0 / float(temperature))        # fold 1/T into the constant

    hw = params["hw"].reshape(H, 1).astype(jnp.float32)
    hb = params["hb"].reshape(H, 1).astype(jnp.float32)
    if inverse:
        # (y - hb) / (hw + 1e-9)  ==  y * inv_hw  +  (-hb * inv_hw)
        inv_hw = 1.0 / (hw + 1e-9)
        hscale, hbias = inv_hw, -hb * inv_hw
    else:
        # (hw + 1e-9) * y + hb
        hscale, hbias = hw + 1e-9, hb

    x_dtype = jnp.dtype(x_dtype)
    itemsize = x_dtype.itemsize

    TB = _choose_tile_rows(B, x_dim, itemsize, hid)
    B_pad = _round_up(B, TB)
    G = B_pad // TB

    xk = x2.astype(x_dtype)
    yk = y.reshape(-1).astype(jnp.float32)
    if B_pad != B:
        xk = jnp.pad(xk, ((0, B_pad - B), (0, 0)))
        yk = jnp.pad(yk, (0, B_pad - B))
    yk = yk.reshape(1, B_pad)
    wk = w.astype(x_dtype)

    out = pl.pallas_call(
        _adapter_kernel,
        out_shape=jax.ShapeDtypeStruct((1, B_pad), jnp.float32),
        grid=(G,),
        in_specs=[
            pl.BlockSpec((TB, x_dim), lambda i: (i, 0)),   # x: streamed per tile
            pl.BlockSpec((1, TB), lambda i: (0, i)),       # y: lane-dense
            pl.BlockSpec((hid, x_dim), lambda i: (0, 0)),  # W (broadcast)
            pl.BlockSpec((H, hid), lambda i: (0, 0)),      # normalized, scaled P
            pl.BlockSpec((H, 1), lambda i: (0, 0)),        # head scale^T
            pl.BlockSpec((H, 1), lambda i: (0, 0)),        # head bias^T
        ],
        out_specs=pl.BlockSpec((1, TB), lambda i: (0, i)),  # lane-dense output
        compiler_params=pltpu.CompilerParams(
            dimension_semantics=("parallel",),
            vmem_limit_bytes=32 * 1024 * 1024),
    )(xk, yk, wk, p_scaled, hscale, hbias)

    return out[0, :B]


def init_params(key, x_dim, num_head=4, hid_dim=32):
    k1, k2, k3 = jax.random.split(key, 3)
    # nn.Linear default init: U(-1/sqrt(fan_in), 1/sqrt(fan_in))
    bound_w = 1.0 / math.sqrt(x_dim)
    w = jax.random.uniform(k1, (hid_dim, x_dim), jnp.float32, -bound_w, bound_w)
    # P: kaiming_uniform(a=sqrt(5)) over (num_head, hid_dim) -> fan_in = hid_dim
    bound_p = 1.0 / math.sqrt(hid_dim)
    p = jax.random.uniform(k2, (num_head, hid_dim), jnp.float32, -bound_p, bound_p)
    # heads: weight ~ U(0.75, 1.25), bias = ones / 8
    hw = jax.random.uniform(k3, (1, num_head), jnp.float32, 0.75, 1.25)
    hb = jnp.ones((1, num_head), jnp.float32) / 8.0
    return {"w": w, "p": p, "hw": hw, "hb": hb}


def _reference(x, y, params, *, temperature=4, inverse=False):
    eps = 1e-8
    B = x.shape[0]
    v = x.reshape(B, -1) @ params["w"].T
    v_n = v / (jnp.linalg.norm(v, axis=-1, keepdims=True) + eps)
    p_n = params["p"] / (jnp.linalg.norm(params["p"], axis=-1, keepdims=True) + eps)
    gate = jax.nn.softmax((v_n @ p_n.T) / temperature, axis=-1)
    yv = y.reshape(-1, 1)
    if inverse:
        heads = (yv - params["hb"]) / (params["hw"] + 1e-9)
    else:
        heads = (params["hw"] + 1e-9) * yv + params["hb"]
    return jnp.sum(gate * heads, axis=-1)


if __name__ == "__main__":
    key = jax.random.PRNGKey(0)
    kx, ky, kp = jax.random.split(key, 3)

    B, x_dim, num_head, hid_dim = 8, 16, 4, 32
    x = jax.random.normal(kx, (B, x_dim), jnp.float32)
    y = jax.random.normal(ky, (B,), jnp.float32)
    params = init_params(kp, x_dim, num_head=num_head, hid_dim=hid_dim)

    out_fwd = model_adapter_forward(x, y, params, temperature=4, inverse=False)
    out_inv = model_adapter_forward(x, y, params, temperature=4, inverse=True)
    out_bf16 = model_adapter_forward(x, y, params, temperature=4, inverse=False,
                                     x_dtype=jnp.bfloat16)
    jax.block_until_ready((out_fwd, out_inv, out_bf16))

    ref_fwd = _reference(x, y, params, temperature=4, inverse=False)
    ref_inv = _reference(x, y, params, temperature=4, inverse=True)

    assert out_fwd.shape == (B,) and out_inv.shape == (B,)
    assert jnp.allclose(out_fwd, ref_fwd, atol=1e-5, rtol=1e-5)
    assert jnp.allclose(out_inv, ref_inv, atol=1e-5, rtol=1e-5)
    # bf16-streamed x/W path: looser tolerance (bf16 mantissa).
    assert jnp.allclose(out_bf16, ref_fwd, atol=5e-2, rtol=5e-2)

    print("KERNEL_OK")
</pallas_src>

<mosaic_0001>
module attributes {stable_mosaic.version = 11 : i64} {
  func.func @_adapter_kernel(%arg0: i32, %arg1: memref<128x16xf32, #tpu.memory_space<vmem>>, %arg2: memref<1x128xf32, #tpu.memory_space<vmem>>, %arg3: memref<32x16xf32, #tpu.memory_space<vmem>>, %arg4: memref<4x32xf32, #tpu.memory_space<vmem>>, %arg5: memref<4x1xf32, #tpu.memory_space<vmem>>, %arg6: memref<4x1xf32, #tpu.memory_space<vmem>>, %arg7: memref<1x128xf32, #tpu.memory_space<vmem>>) attributes {dimension_semantics = [#tpu.dimension_semantics<parallel>], iteration_bounds = array<i64: 1>, scalar_prefetch = 0 : i64, scratch_operands = 0 : i64, tpu.core_type = #tpu.core_type<tc>, window_params = [{transform_indices = @transform_0, window_bounds = array<i64: 128, 16>}, {transform_indices = @transform_1, window_bounds = array<i64: 1, 128>}, {pipeline_mode = #tpu.pipeline_mode<synchronous>, transform_indices = @transform_2, window_bounds = array<i64: 32, 16>}, {pipeline_mode = #tpu.pipeline_mode<synchronous>, transform_indices = @transform_3, window_bounds = array<i64: 4, 32>}, {pipeline_mode = #tpu.pipeline_mode<synchronous>, transform_indices = @transform_4, window_bounds = array<i64: 4, 1>}, {pipeline_mode = #tpu.pipeline_mode<synchronous>, transform_indices = @transform_5, window_bounds = array<i64: 4, 1>}, {transform_indices = @transform_6, window_bounds = array<i64: 1, 128>}]} {
    %c0 = arith.constant 0 : index
    %c0_0 = arith.constant 0 : index
    %0 = vector.load %arg1[%c0, %c0_0] : memref<128x16xf32, #tpu.memory_space<vmem>>, vector<128x16xf32>
    %c0_1 = arith.constant 0 : index
    %c0_2 = arith.constant 0 : index
    %1 = vector.load %arg3[%c0_1, %c0_2] : memref<32x16xf32, #tpu.memory_space<vmem>>, vector<32x16xf32>
    %cst = arith.constant dense<0.000000e+00> : vector<32x128xf32>
    %2 = tpu.matmul %1, %0, %cst {dimension_numbers = #tpu.dot_dimension_numbers<[1], [1], [0], [0], [0, 0, 1, 0], [], []>} : vector<32x16xf32>, vector<128x16xf32>, vector<32x128xf32> -> vector<32x128xf32>
    %3 = arith.mulf %2, %2 : vector<32x128xf32>
    %cst_3 = arith.constant dense<0.000000e+00> : vector<128xf32>
    %4 = vector.multi_reduction <add>, %3, %cst_3 [0] : vector<32x128xf32> to vector<128xf32>
    %5 = vector.shape_cast %4 : vector<128xf32> to vector<1x128xf32>
    %6 = math.sqrt %5 : vector<1x128xf32>
    %cst_4 = arith.constant 9.99999993E-9 : f32
    %7 = vector.broadcast %cst_4 : f32 to vector<1x128xf32>
    %8 = arith.addf %6, %7 : vector<1x128xf32>
    %9 = tpu.reciprocal %8 : vector<1x128xf32> -> vector<1x128xf32>
    %c0_5 = arith.constant 0 : index
    %c0_6 = arith.constant 0 : index
    %10 = vector.load %arg4[%c0_5, %c0_6] : memref<4x32xf32, #tpu.memory_space<vmem>>, vector<4x32xf32>
    %cst_7 = arith.constant dense<0.000000e+00> : vector<4x128xf32>
    %11 = tpu.matmul %10, %2, %cst_7 {dimension_numbers = #tpu.dot_dimension_numbers<[1], [0], [0], [1], [0, 0, 1, 1], [], []>} : vector<4x32xf32>, vector<32x128xf32>, vector<4x128xf32> -> vector<4x128xf32>
    %12 = vector.broadcast %9 : vector<1x128xf32> to vector<4x128xf32>
    %13 = arith.mulf %11, %12 : vector<4x128xf32>
    %cst_8 = arith.constant dense<0xFF800000> : vector<128xf32>
    %14 = vector.multi_reduction <maximumf>, %13, %cst_8 [0] : vector<4x128xf32> to vector<128xf32>
    %15 = vector.shape_cast %14 : vector<128xf32> to vector<1x128xf32>
    %16 = vector.broadcast %15 : vector<1x128xf32> to vector<4x128xf32>
    %17 = arith.subf %13, %16 : vector<4x128xf32>
    %18 = math.exp %17 : vector<4x128xf32>
    %cst_9 = arith.constant dense<0.000000e+00> : vector<128xf32>
    %19 = vector.multi_reduction <add>, %18, %cst_9 [0] : vector<4x128xf32> to vector<128xf32>
    %20 = vector.shape_cast %19 : vector<128xf32> to vector<1x128xf32>
    %21 = tpu.reciprocal %20 : vector<1x128xf32> -> vector<1x128xf32>
    %22 = vector.broadcast %21 : vector<1x128xf32> to vector<4x128xf32>
    %23 = arith.mulf %18, %22 : vector<4x128xf32>
    %c0_10 = arith.constant 0 : index
    %c0_11 = arith.constant 0 : index
    %24 = vector.load %arg5[%c0_10, %c0_11] : memref<4x1xf32, #tpu.memory_space<vmem>>, vector<4x1xf32>
    %c0_12 = arith.constant 0 : index
    %c0_13 = arith.constant 0 : index
    %25 = vector.load %arg2[%c0_12, %c0_13] : memref<1x128xf32, #tpu.memory_space<vmem>>, vector<1x128xf32>
    %26 = vector.broadcast %24 : vector<4x1xf32> to vector<4x128xf32>
    %27 = vector.broadcast %25 : vector<1x128xf32> to vector<4x128xf32>
    %28 = arith.mulf %26, %27 : vector<4x128xf32>
    %c0_14 = arith.constant 0 : index
    %c0_15 = arith.constant 0 : index
    %29 = vector.load %arg6[%c0_14, %c0_15] : memref<4x1xf32, #tpu.memory_space<vmem>>, vector<4x1xf32>
    %30 = vector.broadcast %29 : vector<4x1xf32> to vector<4x128xf32>
    %31 = arith.addf %28, %30 : vector<4x128xf32>
    %32 = arith.mulf %23, %31 : vector<4x128xf32>
    %cst_16 = arith.constant dense<0.000000e+00> : vector<128xf32>
    %33 = vector.multi_reduction <add>, %32, %cst_16 [0] : vector<4x128xf32> to vector<128xf32>
    %34 = vector.shape_cast %33 : vector<128xf32> to vector<1x128xf32>
    %c0_17 = arith.constant 0 : index
    %c0_18 = arith.constant 0 : index
    %35 = vector.load %arg7[%c0_17, %c0_18] : memref<1x128xf32, #tpu.memory_space<vmem>>, vector<1x128xf32>
    tpu.vector_store %arg7[%c0_17, %c0_18], %34 {strides = array<i32>} : memref<1x128xf32, #tpu.memory_space<vmem>>, vector<1x128xf32>,
    return
  }
  func.func @transform_0(%arg0: i32) -> (i32, i32) {
    %c0_i32 = arith.constant 0 : i32
    %c0_i32_0 = arith.constant 0 : i32
    return %arg0, %c0_i32 : i32, i32
  }
  func.func @transform_1(%arg0: i32) -> (i32, i32) {
    %c0_i32 = arith.constant 0 : i32
    %c0_i32_0 = arith.constant 0 : i32
    return %c0_i32, %arg0 : i32, i32
  }
  func.func @transform_2(%arg0: i32) -> (i32, i32) {
    %c0_i32 = arith.constant 0 : i32
    %c0_i32_0 = arith.constant 0 : i32
    %c0_i32_1 = arith.constant 0 : i32
    return %c0_i32, %c0_i32_0 : i32, i32
  }
  func.func @transform_3(%arg0: i32) -> (i32, i32) {
    %c0_i32 = arith.constant 0 : i32
    %c0_i32_0 = arith.constant 0 : i32
    %c0_i32_1 = arith.constant 0 : i32
    return %c0_i32, %c0_i32_0 : i32, i32
  }
  func.func @transform_4(%arg0: i32) -> (i32, i32) {
    %c0_i32 = arith.constant 0 : i32
    %c0_i32_0 = arith.constant 0 : i32
    %c0_i32_1 = arith.constant 0 : i32
    return %c0_i32, %c0_i32_0 : i32, i32
  }
  func.func @transform_5(%arg0: i32) -> (i32, i32) {
    %c0_i32 = arith.constant 0 : i32
    %c0_i32_0 = arith.constant 0 : i32
    %c0_i32_1 = arith.constant 0 : i32
    return %c0_i32, %c0_i32_0 : i32, i32
  }
  func.func @transform_6(%arg0: i32) -> (i32, i32) {
    %c0_i32 = arith.constant 0 : i32
    %c0_i32_0 = arith.constant 0 : i32
    return %c0_i32, %arg0 : i32, i32
  }
}

</mosaic_0001>

<bundles_post_ra>
// kernel: tpu_custom_call.1
= control target key start
LH: loop header
LB: loop body
LE: loop exit
PB: predicated region body
PF: predicated region fallthrough
CT: control target
= control target key end

     0   :  { %vm44_vm0 = vcmask 130048   ;;  %s636_s0 = inlined_call_operand.vmem [shape: f32[128,16], index: 0, kind: input, shape index: {}]   ;;  %s637_s1 = inlined_call_operand.vmem [shape: f32[1,128], index: 1, kind: input, shape index: {}]   ;;  %s638_s2 = inlined_call_operand.vmem [shape: f32[32,16], index: 2, kind: input, shape index: {}]   ;;  %s639_s3 = inlined_call_operand.vmem [shape: f32[4,32], index: 3, kind: input, shape index: {}]   ;;  %s640_s4 = inlined_call_operand.vmem [shape: f32[4,1], index: 4, kind: input, shape index: {}]   ;;  %s641_s5 = inlined_call_operand.vmem [shape: f32[4,1], index: 5, kind: input, shape index: {}]   ;;  %s642_s6 = inlined_call_operand.hbm [shape: f32[1,128], index: 6, kind: output, shape index: {}]  }
   0x1   :  { %v39_v0 = vld [vmem:[%s636_s0 + $0x78] sm:$0xff]  ;;  %v38_v1 = vld [vmem:[%s636_s0 + $0x70] sm:$0xff]  ;;  %v37_v2 = vld [vmem:[%s636_s0 + $0x68] sm:$0xff] }
   0x2   :  { %399 = vmatprep.subr.msk.mxu0 %vm44_vm0, %v39_v0  ;;  %v40_v3 = vld [vmem:[%s638_s2] sm:$0xff] }
   0x3   :  { %400 = vmatpush3.xpose.msk.msra.mxu0 %vm44_vm0, %v39_v0  ;;  %431 = vmatprep.mubr.msk.f32.mxu0 %vm44_vm0, %v40_v3 }
   0x4   :  { %401 = vmatprep.subr.msk.mxu0 %vm44_vm0, %v38_v1 }
   0x7   :  { %402 = vmatpush3.xpose.msk.msra.mxu0 %vm44_vm0, %v38_v1 }
   0x8   :  { %11 = vsyncpa [#allocation3], 0  ;;  %403 = vmatprep.subr.msk.mxu0 %vm44_vm0, %v37_v2  ;;  %v36_v4 = vld [vmem:[%s636_s0 + $0x60] sm:$0xff]  ;;  %v35_v5 = vld [vmem:[%s636_s0 + $0x58] sm:$0xff]  ;;  %v483_v20 = vmov 0.0   ;;  %vm484_vm1 = vmmov 0  }
   0x9   :  { %v34_v6 = vld [vmem:[%s636_s0 + $0x50] sm:$0xff]  ;;  %v33_v7 = vld [vmem:[%s636_s0 + $0x48] sm:$0xff]  ;;  %v32_v8 = vld [vmem:[%s636_s0 + $0x40] sm:$0xff]  ;;  %437 = vmatprep.subr.mxu1 %v483_v20  ;;  %445 = vmatprep.mubr.msk.f32.mxu1 %vm484_vm1, %v483_v20  ;;  %v485_v22 = vmov 0   ;;  %vm213_vm2 = vcmask 261120   ;;  %vm288_vm5 = vcmask 1043456  }
   0xa   :  { %v31_v9 = vld [vmem:[%s636_s0 + $0x38] sm:$0xff]  ;;  %v30_v10 = vld [vmem:[%s636_s0 + $0x30] sm:$0xff]  ;;  %v29_v11 = vld [vmem:[%s636_s0 + $0x28] sm:$0xff]  ;;  %452 = vset.pattern.permute.xlu0 %v485_v22  ;;  %s486_s16 = smov [#allocation2]  }
   0xb   :  { %404 = vmatpush3.xpose.msk.msra.mxu0 %vm44_vm0, %v37_v2  ;;  %v28_v12 = vld [vmem:[%s636_s0 + $0x20] sm:$0xff]  ;;  %v27_v13 = vld [vmem:[%s636_s0 + $0x18] sm:$0xff]  ;;  %v26_v14 = vld [vmem:[%s636_s0 + $0x10] sm:$0xff]  ;;  %s344_s17 = sshll.u32 %s486_s16, 4  ;;  %s345_s17 = int_to_ptr.vmem [resolvable:$true] %s344_s17 }
   0xc   :  { %405 = vmatprep.subr.msk.mxu0 %vm44_vm0, %v36_v4  ;;  %v25_v15 = vld [vmem:[%s636_s0 + $0x8] sm:$0xff]  ;;  %v24_v16 = vld [vmem:[%s636_s0] sm:$0xff]  ;;  %v42_v18 = vld [vmem:[%s638_s2 + $0x10] sm:$0xff]  ;;  %s461_s18 = scalar_lea.vmem %s345_s17, 16  ;;  %p466_p1 = scmp.lt.s32.totalorder %s345_s17, %s345_s17 }
   0xd   :  { %v41_v17 = vld [vmem:[%s638_s2 + $0x8] sm:$0xff]  ;;  %v43_v19 = vld [vmem:[%s638_s2 + $0x18] sm:$0xff]  ;;  %v308_v21 = vld [vmem:[%s640_s4] sm:$0xf]  ;;  %p462_p0 = scmp.ne.s32.totalorder %s345_s17, %s461_s18 }
   0xe   :  { %312 = vperm.xlu0 %452, %v308_v21   ;;  %v322_v23 = vld [vmem:[%s641_s5] sm:$0xf] }
   0xf   :  { %406 = vmatpush3.xpose.msk.msra.mxu0 %vm44_vm0, %v36_v4  ;;  %v212_v34 = vld [vmem:[%s639_s3] sm:$0xf] }
  0x10   :  { %407 = vmatprep.subr.msk.mxu0 %vm44_vm0, %v35_v5 }
  0x12   :  { %325 = vperm.xlu0 %452, %v322_v23  }
  0x13   :  { %408 = vmatpush3.xpose.msk.msra.mxu0 %vm44_vm0, %v35_v5 }
  0x14   :  { %409 = vmatprep.subr.msk.mxu0 %vm44_vm0, %v34_v6 }
  0x17   :  { %410 = vmatpush3.xpose.msk.msra.mxu0 %vm44_vm0, %v34_v6  ;;  %v373_v6 = vld [vmem:[%s637_s1] ss:$0 sm:$0xff]  ;;  %s465_s1 = scalar_lea.vmem %s345_s17, 32 }
  0x18   :  { %411 = vmatprep.subr.msk.mxu0 %vm44_vm0, %v33_v7  ;;  %p467_p2 = scmp.lt.s32.totalorder %s465_s1, %s461_s18 }
  0x1a   :  { %p468_p3 = por %p467_p2, %p466_p1 }
  0x1b   :  { %412 = vmatpush3.xpose.msk.msra.mxu0 %vm44_vm0, %v33_v7 }
  0x1c   :  { %413 = vmatprep.subr.msk.mxu0 %vm44_vm0, %v32_v8  ;;  %p469_p4 = pnand %p468_p3, %p462_p0 }
  0x1f   :  { %414 = vmatpush3.xpose.msk.msra.mxu0 %vm44_vm0, %v32_v8 }
  0x20   :  { %415 = vmatprep.subr.msk.mxu0 %vm44_vm0, %v31_v9 }
  0x23   :  { %416 = vmatpush3.xpose.msk.msra.mxu0 %vm44_vm0, %v31_v9 }
  0x24   :  { %417 = vmatprep.subr.msk.mxu0 %vm44_vm0, %v30_v10 }
  0x27   :  { %418 = vmatpush3.xpose.msk.msra.mxu0 %vm44_vm0, %v30_v10 }
  0x28   :  { %419 = vmatprep.subr.msk.mxu0 %vm44_vm0, %v29_v11 }
  0x2b   :  { %420 = vmatpush3.xpose.msk.msra.mxu0 %vm44_vm0, %v29_v11 }
  0x2c   :  { %421 = vmatprep.subr.msk.mxu0 %vm44_vm0, %v28_v12 }
  0x2f   :  { %422 = vmatpush3.xpose.msk.msra.mxu0 %vm44_vm0, %v28_v12 }
  0x30   :  { %423 = vmatprep.subr.msk.mxu0 %vm44_vm0, %v27_v13 }
  0x33   :  { %424 = vmatpush3.xpose.msk.msra.mxu0 %vm44_vm0, %v27_v13 }
  0x34   :  { %425 = vmatprep.subr.msk.mxu0 %vm44_vm0, %v26_v14 }
  0x37   :  { %426 = vmatpush3.xpose.msk.msra.mxu0 %vm44_vm0, %v26_v14 }
  0x38   :  { %427 = vmatprep.subr.msk.mxu0 %vm44_vm0, %v25_v15 }
  0x3b   :  { %428 = vmatpush3.xpose.msk.msra.mxu0 %vm44_vm0, %v25_v15 }
  0x3c   :  { %429 = vmatprep.subr.msk.mxu0 %vm44_vm0, %v24_v16 }
  0x3f   :  { %430 = vmatpush3.xpose.msk.msra.mxu0 %vm44_vm0, %v24_v16 }
  0x42   :  { %432 = vmatmul.mubr.msk.f32.vlgmr.msra.gmra.mxu0 %vm44_vm0, %v41_v17 }
  0x43   :  { %434 = vmatprep.mubr.msk.f32.mxu0 %vm44_vm0, %v42_v18 }
  0x46   :  { %435 = vmatmul.mubr.msk.f32.gmra.mxu0 %vm44_vm0, %v43_v19 }
  0x89   :  { %v313_v5 = vpop.permute.xlu0 %312 }
  0x8a   :  { %v321_v7 = vmul.f32 %v373_v6, %v313_v5 }
  0x8d   :  { %v326_v8 = vpop.permute.xlu0 %325 }
  0x8e   :  { %v328_v11 = vadd.f32 %v326_v8, %v321_v7 }
 0x102   :  { %v433_v24 = vpop.f32.mrf.mxu0 }
 0x103   :  { %v191_v26 = vmul.f32 %v433_v24, %v433_v24 }
 0x104   :  { %v171_v25 = vpop.f32.mrf.mxu0 }
 0x105   :  { %v190_v27 = vmul.f32 %v171_v25, %v171_v25 }
 0x106   :  { %v436_v28 = vpop.f32.mrf.mxu0 }
 0x107   :  { %v194_v29 = vadd.f32 %v191_v26, %v190_v27  ;;  %438 = vmatpush3.msra.mxu1 %v436_v28  ;;  %v193_v32 = vmul.f32 %v436_v28, %v436_v28 }
 0x108   :  { %v181_v30 = vpop.f32.mrf.mxu0  ;;  %439 = vmatprep.subr.mxu1 %v483_v20 }
 0x109   :  { %v192_v31 = vmul.f32 %v181_v30, %v181_v30  ;;  %440 = vmatpush3.msra.mxu1 %v181_v30 }
 0x10a   :  { %441 = vmatprep.subr.mxu1 %v483_v20 }
 0x10b   :  { %v195_v33 = vadd.f32 %v194_v29, %v192_v31  ;;  %442 = vmatpush3.msra.mxu1 %v433_v24 }
 0x10c   :  { %443 = vmatprep.subr.mxu1 %v483_v20 }
 0x10d   :  { %v196_v35 = vadd.f32 %v195_v33, %v193_v32  ;;  %444 = vmatpush3.msra.mxu1 %v171_v25 }
 0x10e   :  { %446 = vmatmul.mubr.msk.f32.vlgmr.msra.gmra.mxu1 %vm213_vm2, %v212_v34 }
 0x10f   :  { %v197_v36 = vrot.slane %v196_v35, 4 }
 0x111   :  { %v198_v37 = vadd.f32 %v197_v36, %v196_v35 }
 0x113   :  { %v199_v38 = vrot.slane %v198_v37, 2 }
 0x115   :  { %v200_v39 = vadd.f32 %v199_v38, %v198_v37 }
 0x117   :  { %v201_v40 = vrot.slane %v200_v39, 1 }
 0x119   :  { %v202_v41 = vadd.f32 %v201_v40, %v200_v39 }
 0x11b   :  { %453 = vrsqrt.f32 %v202_v41  ;;  %vm205_vm3 = vcmp.eq.f32.partialorder %v202_v41, inf  ;;  %v208_v45 = vand.u32 2147483648, %v202_v41  ;;  %vm207_vm4 = vcmp.eq.f32.partialorder %v202_v41, 0.0 }
 0x128   :  { %v454_v42 = vpop.eup %453 }
 0x129   :  { %v204_v43 = vmul.f32 %v454_v42, %v202_v41 }
 0x12b   :  { %v206_v44 = vsel %vm205_vm3, %v202_v41, %v204_v43 }
 0x12c   :  { %v209_v46 = vsel %vm207_vm4, %v208_v45, %v206_v44 }
 0x12d   :  { %v210_v47 = vadd.f32 1e-08, %v209_v46 }
 0x12f   :  { %455 = vrcp.f32 %v210_v47 }
 0x13c   :  { %v456_v48 = vpop.eup %455 }
 0x1ce   :  { %v283_v49 = vpop.f32.mrf.mxu1 }
 0x1cf   :  { %v287_v50 = vmul.f32 %v456_v48, %v283_v49 }
 0x1d0   :  { %v447_v51 = vpop.f32.mrf.mxu1 }
 0x1d1   :  { %v289_v52 = vsel %vm288_vm5, %v287_v50, -inf }
 0x1d2   :  { %v290_v53 = vrot.slane %v289_v52, 4 }
 0x1d4   :  { %v291_v54 = vmax.f32 %v289_v52, %v290_v53 }
 0x1d6   :  { %v292_v55 = vrot.slane %v291_v54, 2 }
 0x1d8   :  { %v293_v56 = vmax.f32 %v291_v54, %v292_v55 }
 0x1da   :  { %v294_v57 = vrot.slane %v293_v56, 1 }
 0x1dc   :  { %v295_v58 = vmax.f32 %v293_v56, %v294_v57 }
 0x1de   :  { %v296_v59 = vsub.f32 %v287_v50, %v295_v58 }
 0x1e0   :  { %v297_v60 = vmul.f32 1.442695, %v296_v59 }
 0x1e2   :  { %457 = vpow2.f32 %v297_v60 }
 0x1ef   :  { %v458_v61 = vpop.eup %457 }
 0x1f0   :  { %v299_v62 = vsel %vm288_vm5, %v458_v61, 0.0 }
 0x1f1   :  { %v300_v63 = vrot.slane %v299_v62, 4 }
 0x1f3   :  { %v301_v0 = vadd.f32 %v300_v63, %v299_v62 }
 0x1f5   :  { %v302_v1 = vrot.slane %v301_v0, 2 }
 0x1f7   :  { %v303_v2 = vadd.f32 %v302_v1, %v301_v0 }
 0x1f9   :  { %v304_v3 = vrot.slane %v303_v2, 1 }
 0x1fb   :  { %v305_v4 = vadd.f32 %v304_v3, %v303_v2 }
 0x1fd   :  { %459 = vrcp.f32 %v305_v4 }
 0x20a   :  { %v460_v9 = vpop.eup %459 }
 0x20b   :  { %v307_v10 = vmul.f32 %v460_v9, %v458_v61 }
 0x20d   :  { %v329_v12 = vmul.f32 %v328_v11, %v307_v10 }
 0x20f   :  { %v330_v13 = vsel %vm288_vm5, %v329_v12, 0.0 }
 0x210   :  { %v331_v14 = vrot.slane %v330_v13, 4 }
 0x212   :  { %v332_v15 = vadd.f32 %v331_v14, %v330_v13 }
 0x214   :  { %v333_v16 = vrot.slane %v332_v15, 2 }
 0x216   :  { %v334_v17 = vadd.f32 %v333_v16, %v332_v15 }
 0x218   :  { %v335_v18 = vrot.slane %v334_v17, 1 }
 0x21a   :  { %v336_v19 = vadd.f32 %v335_v18, %v334_v17 }
 0x21c   :  { %337 = vst [vmem:[#allocation2] sm:$0x1] %v336_v19 }
 0x21d   :  { %472 = shalt.err (!%p469_p4)
}
 0x21e   :  { %347 = dma.vmem_to_hbm [thread:$0]  %s345_s17, 16, %s642_s6, [#allocation3]  }
 0x21f   :  { %481 = dma.done.wait [#allocation3], 16  }
 0x220   :  { %482 = vsyncadd [#allocation3], 4294967280 }
 0x221   :  { %351 = vsyncpa [#allocation3], 1 }

</bundles_post_ra>
